<compile_context>
chip_gen: v5e
topology: v5e:2x2
jax: 0.10.0
libtpu: 0.0.40
codegen_flags: <defaults>
</compile_context>

<pallas_src>
import functools

import jax
import jax.numpy as jnp
import numpy as np
from jax.experimental import pallas as pl
from jax.experimental.pallas import tpu as pltpu


def _graph_conv_layer_kernel(x_ref, wa_ref, ba_ref, gso_ref, w_ref, b_ref,
                             o_ref, *, Ks, graph_conv_type):
    # x_ref  : (c_in,  T*N)   one batch element (batch dim squeezed), NCHW flattened
    # wa_ref : (c_out, c_in)  Align folded to a matmul (1x1 conv W / padded identity / identity)
    # ba_ref : (c_out, 1)     Align bias (zeros unless c_in > c_out)
    # gso_ref: (T*N, T*N)     kron(I_T, gso^T): vertex mixing as one lane-dense matmul
    # w_ref  : (c_out, n_terms*c_out)  graph-conv weights, transposed & stacked over k
    # b_ref  : (c_out, 1)
    # o_ref  : (c_out, T*N)   x_gc_out, already in NCHW layout
    f32 = jnp.float32

    # ---- Align: x_gc_in (also the residual term) ----
    x0 = jnp.dot(wa_ref[...], x_ref[...], preferred_element_type=f32) + ba_ref[...]

    # ---- graph-convolution terms (static, tiny unroll over Ks) ----
    if graph_conv_type == "graph_conv":
        terms = [jnp.dot(x0, gso_ref[...], preferred_element_type=f32)]
    else:  # 'cheb_graph_conv'
        terms = [x0]
        if Ks >= 2:
            terms.append(jnp.dot(x0, gso_ref[...], preferred_element_type=f32))
        for _ in range(2, Ks):
            terms.append(
                2.0 * jnp.dot(terms[-1], gso_ref[...], preferred_element_type=f32)
                - terms[-2])

    s = terms[0] if len(terms) == 1 else jnp.concatenate(terms, axis=0)

    # ---- single stacked weight contraction + bias ----
    gc = jnp.dot(w_ref[...], s, preferred_element_type=f32) + b_ref[...]

    # ---- residual add, lane-dense NCHW store ----
    o_ref[...] = (gc + x0).astype(o_ref.dtype)


def graph_conv_layer_forward(x, raw, *, Ks, graph_conv_type, c_out):
    """x: (B, c_in, T, N) float32 -> (B, c_out, T, N)."""
    B, c_in, T, N = x.shape
    TN = T * N
    f32 = jnp.float32

    # --- fold Align into a single (c_out, c_in) matmul ---
    if c_in > c_out:
        wa = raw["align_w"].astype(f32)                      # 1x1 conv weight
        ba = raw["align_b"].astype(f32).reshape(c_out, 1)
    else:                                                    # identity / zero-pad
        wa = jnp.eye(c_out, c_in, dtype=f32)
        ba = jnp.zeros((c_out, 1), f32)

    # --- vertex mixing as one block-diagonal lane-space matmul ---
    gso_bd = jnp.kron(jnp.eye(T, dtype=f32), raw["gso"].astype(f32).T)   # (T*N, T*N)

    # --- stack/transpose graph-conv weights so one matmul covers all orders ---
    if graph_conv_type == "graph_conv":
        w_flat = raw["gc_weight"].astype(f32).T                          # (c_out, c_out)
    else:
        W = raw["gc_weight"].astype(f32)                                 # (Ks, c_out, c_out)
        w_flat = jnp.transpose(W, (2, 0, 1)).reshape(c_out, W.shape[0] * c_out)
    b = raw["gc_bias"].astype(f32).reshape(c_out, 1)

    x2 = x.astype(f32).reshape(B, c_in, TN)      # free metadata reshape (contiguous)

    full2d = lambda a: pl.BlockSpec(a.shape, lambda bidx: (0, 0))

    grid_spec = pltpu.PrefetchScalarGridSpec(
        num_scalar_prefetch=0,
        grid=(B,),
        in_specs=[
            pl.BlockSpec((pl.Squeezed(), c_in, TN), lambda bidx: (bidx, 0, 0)),
            full2d(wa), full2d(ba), full2d(gso_bd), full2d(w_flat), full2d(b),
        ],
        out_specs=pl.BlockSpec((pl.Squeezed(), c_out, TN), lambda bidx: (bidx, 0, 0)),
    )

    kernel = functools.partial(_graph_conv_layer_kernel,
                               Ks=Ks, graph_conv_type=graph_conv_type)

    out = pl.pallas_call(
        kernel,
        out_shape=jax.ShapeDtypeStruct((B, c_out, TN), f32),
        grid_spec=grid_spec,
        compiler_params=pltpu.CompilerParams(dimension_semantics=("parallel",)),
    )(x2, wa, ba, gso_bd, w_flat, b)

    return out.reshape(B, c_out, T, N)           # free metadata reshape (already NCHW)


def reference_forward(x, raw, *, Ks, graph_conv_type, c_out):
    """Pure-JAX reference mirroring the PyTorch computation order."""
    B, c_in, T, N = x.shape
    if c_in > c_out:
        x_al = (jnp.einsum("oc,bctn->botn", raw["align_w"], x)
                + raw["align_b"][None, :, None, None])
    elif c_in < c_out:
        x_al = jnp.concatenate(
            [x, jnp.zeros((B, c_out - c_in, T, N), x.dtype)], axis=1)
    else:
        x_al = x
    xp = jnp.transpose(x_al, (0, 2, 3, 1))            # (B, T, N, C)
    gso = raw["gso"]
    if graph_conv_type == "graph_conv":
        fm = jnp.einsum("hi,btij->bthj", gso, xp)
        gc = jnp.einsum("bthi,ij->bthj", fm, raw["gc_weight"]) + raw["gc_bias"]
    else:
        if Ks == 1:
            x_list = [xp]
        else:
            x_list = [xp, jnp.einsum("hi,btij->bthj", gso, xp)]
            for k in range(2, Ks):
                x_list.append(jnp.einsum("hi,btij->bthj", 2.0 * gso, x_list[k - 1])
                              - x_list[k - 2])
        xs = jnp.stack(x_list, axis=2)                # (B, T, Ks, N, C)
        gc = jnp.einsum("btkhi,kij->bthj", xs, raw["gc_weight"]) + raw["gc_bias"]
    gc = jnp.transpose(gc, (0, 3, 1, 2))              # (B, C, T, N)
    return gc + x_al


def make_params(key, *, c_in, c_out, N, Ks, graph_conv_type):
    """Deterministic synthetic parameters (matmul-form of the PyTorch weights)."""
    keys = jax.random.split(key, 5)
    rnd = lambda k, s: (0.1 * jax.random.normal(k, s)).astype(jnp.float32)
    g = rnd(keys[0], (N, N))
    raw = {
        "gso": 0.5 * (g + g.T),
        "gc_bias": rnd(keys[2], (c_out,)),
    }
    if graph_conv_type == "graph_conv":
        raw["gc_weight"] = rnd(keys[1], (c_out, c_out))
    else:
        raw["gc_weight"] = rnd(keys[1], (Ks, c_out, c_out))
    if c_in > c_out:                                  # Align uses a real 1x1 conv
        raw["align_w"] = rnd(keys[3], (c_out, c_in))
        raw["align_b"] = rnd(keys[4], (c_out,))
    return raw


if __name__ == "__main__":
    key = jax.random.PRNGKey(0)
    configs = [
        # (name,                 type,               B, c_in, c_out, T, N,  Ks)
        ("cheb_pad_align",       "cheb_graph_conv",  2, 4,    16,    8, 16, 3),
        ("cheb_identity_align",  "cheb_graph_conv",  2, 8,    8,     8, 16, 2),
        ("graph_conv_conv_align", "graph_conv",      2, 16,   8,     8, 16, 1),
    ]
    for name, gtype, B, c_in, c_out, T, N, Ks in configs:
        key, kx, kp = jax.random.split(key, 3)
        x = jax.random.normal(kx, (B, c_in, T, N), dtype=jnp.float32)   # NCHW like PyTorch
        raw = make_params(kp, c_in=c_in, c_out=c_out, N=N, Ks=Ks, graph_conv_type=gtype)

        fwd = jax.jit(functools.partial(graph_conv_layer_forward,
                                        Ks=Ks, graph_conv_type=gtype, c_out=c_out))
        out = jax.block_until_ready(fwd(x, raw))
        ref = jax.block_until_ready(
            reference_forward(x, raw, Ks=Ks, graph_conv_type=gtype, c_out=c_out))

        assert out.shape == (B, c_out, T, N), (name, out.shape)
        np.testing.assert_allclose(np.asarray(out), np.asarray(ref),
                                   rtol=2e-4, atol=2e-4, err_msg=name)
    print("KERNEL_OK")
</pallas_src>

<mosaic_0001>
module attributes {stable_mosaic.version = 11 : i64} {
  func.func @_graph_conv_layer_kernel(%arg0: i32, %arg1: memref<1x4x128xf32, #tpu.memory_space<vmem>>, %arg2: memref<16x4xf32, #tpu.memory_space<vmem>>, %arg3: memref<16x1xf32, #tpu.memory_space<vmem>>, %arg4: memref<128x128xf32, #tpu.memory_space<vmem>>, %arg5: memref<16x48xf32, #tpu.memory_space<vmem>>, %arg6: memref<16x1xf32, #tpu.memory_space<vmem>>, %arg7: memref<1x16x128xf32, #tpu.memory_space<vmem>>) attributes {dimension_semantics = [#tpu.dimension_semantics<parallel>], iteration_bounds = array<i64: 2>, scalar_prefetch = 0 : i64, scratch_operands = 0 : i64, tpu.core_type = #tpu.core_type<tc>, window_params = [{transform_indices = @transform_0, window_bounds = array<i64: 1, 4, 128>}, {pipeline_mode = #tpu.pipeline_mode<synchronous>, transform_indices = @transform_1, window_bounds = array<i64: 16, 4>}, {pipeline_mode = #tpu.pipeline_mode<synchronous>, transform_indices = @transform_2, window_bounds = array<i64: 16, 1>}, {pipeline_mode = #tpu.pipeline_mode<synchronous>, transform_indices = @transform_3, window_bounds = array<i64: 128, 128>}, {pipeline_mode = #tpu.pipeline_mode<synchronous>, transform_indices = @transform_4, window_bounds = array<i64: 16, 48>}, {pipeline_mode = #tpu.pipeline_mode<synchronous>, transform_indices = @transform_5, window_bounds = array<i64: 16, 1>}, {transform_indices = @transform_6, window_bounds = array<i64: 1, 16, 128>}]} {
    %c0 = arith.constant 0 : index
    %c0_0 = arith.constant 0 : index
    %0 = vector.load %arg2[%c0, %c0_0] : memref<16x4xf32, #tpu.memory_space<vmem>>, vector<16x4xf32>
    %c0_1 = arith.constant 0 : index
    %c0_2 = arith.constant 0 : index
    %c0_3 = arith.constant 0 : index
    %1 = vector.load %arg1[%c0_1, %c0_2, %c0_3] : memref<1x4x128xf32, #tpu.memory_space<vmem>>, vector<1x4x128xf32>
    %2 = vector.shape_cast %1 : vector<1x4x128xf32> to vector<4x128xf32>
    %cst = arith.constant dense<0.000000e+00> : vector<16x128xf32>
    %3 = tpu.matmul %0, %2, %cst {dimension_numbers = #tpu.dot_dimension_numbers<[1], [0], [0], [1], [0, 0, 1, 1], [], []>} : vector<16x4xf32>, vector<4x128xf32>, vector<16x128xf32> -> vector<16x128xf32>
    %c0_4 = arith.constant 0 : index
    %c0_5 = arith.constant 0 : index
    %4 = vector.load %arg3[%c0_4, %c0_5] : memref<16x1xf32, #tpu.memory_space<vmem>>, vector<16x1xf32>
    %5 = vector.broadcast %4 : vector<16x1xf32> to vector<16x128xf32>
    %6 = arith.addf %3, %5 : vector<16x128xf32>
    %c0_6 = arith.constant 0 : index
    %c0_7 = arith.constant 0 : index
    %7 = vector.load %arg4[%c0_6, %c0_7] : memref<128x128xf32, #tpu.memory_space<vmem>>, vector<128x128xf32>
    %cst_8 = arith.constant dense<0.000000e+00> : vector<16x128xf32>
    %8 = tpu.matmul %6, %7, %cst_8 {dimension_numbers = #tpu.dot_dimension_numbers<[1], [0], [0], [1], [0, 0, 1, 1], [], []>} : vector<16x128xf32>, vector<128x128xf32>, vector<16x128xf32> -> vector<16x128xf32>
    %c0_9 = arith.constant 0 : index
    %c0_10 = arith.constant 0 : index
    %9 = vector.load %arg4[%c0_9, %c0_10] : memref<128x128xf32, #tpu.memory_space<vmem>>, vector<128x128xf32>
    %cst_11 = arith.constant dense<0.000000e+00> : vector<16x128xf32>
    %10 = tpu.matmul %8, %9, %cst_11 {dimension_numbers = #tpu.dot_dimension_numbers<[1], [0], [0], [1], [0, 0, 1, 1], [], []>} : vector<16x128xf32>, vector<128x128xf32>, vector<16x128xf32> -> vector<16x128xf32>
    %cst_12 = arith.constant 2.000000e+00 : f32
    %11 = vector.broadcast %cst_12 : f32 to vector<16x128xf32>
    %12 = arith.mulf %11, %10 : vector<16x128xf32>
    %13 = arith.subf %12, %6 : vector<16x128xf32>
    %14 = tpu.concatenate %6, %8, %13 in 0 : vector<16x128xf32>, vector<16x128xf32>, vector<16x128xf32> -> vector<48x128xf32>
    %c0_13 = arith.constant 0 : index
    %c0_14 = arith.constant 0 : index
    %15 = vector.load %arg5[%c0_13, %c0_14] : memref<16x48xf32, #tpu.memory_space<vmem>>, vector<16x48xf32>
    %cst_15 = arith.constant dense<0.000000e+00> : vector<16x128xf32>
    %16 = tpu.matmul %15, %14, %cst_15 {dimension_numbers = #tpu.dot_dimension_numbers<[1], [0], [0], [1], [0, 0, 1, 1], [], []>} : vector<16x48xf32>, vector<48x128xf32>, vector<16x128xf32> -> vector<16x128xf32>
    %c0_16 = arith.constant 0 : index
    %c0_17 = arith.constant 0 : index
    %17 = vector.load %arg6[%c0_16, %c0_17] : memref<16x1xf32, #tpu.memory_space<vmem>>, vector<16x1xf32>
    %18 = vector.broadcast %17 : vector<16x1xf32> to vector<16x128xf32>
    %19 = arith.addf %16, %18 : vector<16x128xf32>
    %20 = arith.addf %19, %6 : vector<16x128xf32>
    %c0_18 = arith.constant 0 : index
    %c0_19 = arith.constant 0 : index
    %c0_20 = arith.constant 0 : index
    %21 = vector.load %arg7[%c0_18, %c0_19, %c0_20] : memref<1x16x128xf32, #tpu.memory_space<vmem>>, vector<1x16x128xf32>
    %22 = vector.shape_cast %21 : vector<1x16x128xf32> to vector<16x128xf32>
    %23 = vector.shape_cast %20 : vector<16x128xf32> to vector<1x16x128xf32>
    tpu.vector_store %arg7[%c0_18, %c0_19, %c0_20], %23 {strides = array<i32>} : memref<1x16x128xf32, #tpu.memory_space<vmem>>, vector<1x16x128xf32>,
    return
  }
  func.func @transform_0(%arg0: i32) -> (i32, i32, i32) {
    %c0_i32 = arith.constant 0 : i32
    %c0_i32_0 = arith.constant 0 : i32
    %c0_i32_1 = arith.constant 0 : i32
    return %arg0, %c0_i32, %c0_i32_0 : i32, i32, i32
  }
  func.func @transform_1(%arg0: i32) -> (i32, i32) {
    %c0_i32 = arith.constant 0 : i32
    %c0_i32_0 = arith.constant 0 : i32
    %c0_i32_1 = arith.constant 0 : i32
    return %c0_i32, %c0_i32_0 : i32, i32
  }
  func.func @transform_2(%arg0: i32) -> (i32, i32) {
    %c0_i32 = arith.constant 0 : i32
    %c0_i32_0 = arith.constant 0 : i32
    %c0_i32_1 = arith.constant 0 : i32
    return %c0_i32, %c0_i32_0 : i32, i32
  }
  func.func @transform_3(%arg0: i32) -> (i32, i32) {
    %c0_i32 = arith.constant 0 : i32
    %c0_i32_0 = arith.constant 0 : i32
    %c0_i32_1 = arith.constant 0 : i32
    return %c0_i32, %c0_i32_0 : i32, i32
  }
  func.func @transform_4(%arg0: i32) -> (i32, i32) {
    %c0_i32 = arith.constant 0 : i32
    %c0_i32_0 = arith.constant 0 : i32
    %c0_i32_1 = arith.constant 0 : i32
    return %c0_i32, %c0_i32_0 : i32, i32
  }
  func.func @transform_5(%arg0: i32) -> (i32, i32) {
    %c0_i32 = arith.constant 0 : i32
    %c0_i32_0 = arith.constant 0 : i32
    %c0_i32_1 = arith.constant 0 : i32
    return %c0_i32, %c0_i32_0 : i32, i32
  }
  func.func @transform_6(%arg0: i32) -> (i32, i32, i32) {
    %c0_i32 = arith.constant 0 : i32
    %c0_i32_0 = arith.constant 0 : i32
    %c0_i32_1 = arith.constant 0 : i32
    return %arg0, %c0_i32, %c0_i32_0 : i32, i32, i32
  }
}

</mosaic_0001>

<bundles_post_ra>
// kernel: graph_conv_layer_forward.1
= control target key start
LH: loop header
LB: loop body
LE: loop exit
PB: predicated region body
PF: predicated region fallthrough
CT: control target
= control target key end

     0   :  { %s554_s21 = smov 0   ;;  %s649_s0 = inlined_call_operand.vmem [shape: f32[2,4,128], index: 0, kind: input, shape index: {}]   ;;  %s650_s1 = inlined_call_operand.vmem [shape: f32[16,4], index: 1, kind: input, shape index: {}]   ;;  %s651_s2 = inlined_call_operand.vmem [shape: f32[16,1], index: 2, kind: input, shape index: {}]   ;;  %s652_s3 = inlined_call_operand.vmem [shape: f32[128,128], index: 3, kind: input, shape index: {}]   ;;  %s653_s4 = inlined_call_operand.vmem [shape: f32[16,48], index: 4, kind: input, shape index: {}]   ;;  %s654_s5 = inlined_call_operand.vmem [shape: f32[16,1], index: 5, kind: input, shape index: {}]   ;;  %s655_s6 = inlined_call_operand.vmem [shape: f32[2,16,128], index: 6, kind: output, shape index: {}]  }
   0x1 LB: > { %s467_s22 = sadd.s32 4294967295, %s516_s21   ;;  %p471_p0 = scmp.ge.s32.totalorder %s516_s21, 1  ;;  %s516_s21 = sphi %s554_s21, %s16_s21  }
   0x2   : > { %p211_p1 = scmp.lt.s32.totalorder %s516_s21, 3 }
   0x4   : > { %p212_p2 = pnand %p471_p0, %p211_p1 }
   0x5   : > { %p240_p3 = scmp.lt.s32.totalorder (!%p212_p2), %s467_s22, 1 }
   0x6   : > { %215 = sbr.rel (%p212_p2) target bundleno = 571 (0x23b), region = 44 }
   0xb   : > { %v252_v0 = vld [vmem:[%s651_s2] sm:$0xff]  ;;  %v518_v1 = vmov 0   ;;  %v313_v2 = vld [vmem:[%s652_s3 + $0x78] sm:$0xff]  ;;  %s657_s22 = smov (!%p240_p3, %s467_s22), 1  ;;  %v312_v3 = vld [vmem:[%s652_s3 + $0x70] sm:$0xff]  ;;  %vm271_vm0 = vcmask 1043456  }
   0xc   : > { %508 = vset.pattern.permute.xlu0 %v518_v1  ;;  %509 = vset.pattern.permute.xlu1 %v518_v1  ;;  %s472_s29 = sshll.u32 %s657_s22, 2  ;;  %v249_v4 = vld [vmem:[%s650_s1] sm:$0xff]  ;;  %vm264_vm1 = vcmask 31744   ;;  %v311_v5 = vld [vmem:[%s652_s3 + $0x68] sm:$0xff]  ;;  %v309_v9 = vld [vmem:[%s652_s3 + $0x58] sm:$0xff]  ;;  %vm378_vm2 = vcmask 392192  }
   0xd   : > { %256 = vperm.xlu0 %508, %v252_v0   ;;  %483 = vmatpush.msra.mxu1 %v313_v2  ;;  %s243_s8 = scalar_lea.vmem %s649_s0, %s472_s29  ;;  %v253_v7 = vld [vmem:[%s651_s2 + $0x8] sm:$0xff]  ;;  %v310_v8 = vld [vmem:[%s652_s3 + $0x60] sm:$0xff]  ;;  %v308_v10 = vld [vmem:[%s652_s3 + $0x50] sm:$0xff]  ;;  %s482_s7 = sshll.u32 %s657_s22, 4 }
   0xe   : > { %337 = vmatpush.msra.mxu2 %v313_v2  ;;  %v251_v6 = vld [vmem:[%s243_s8] sm:$0xf]  ;;  %v250_v11 = vld [vmem:[%s650_s1 + $0x8] sm:$0xff]  ;;  %v305_v14 = vld [vmem:[%s652_s3 + $0x38] sm:$0xff]  ;;  %s248_s10 = scalar_lea.vmem %s655_s6, %s482_s7 }
   0xf   : > { %484 = vmatpush.msra.mxu1 %v312_v3  ;;  %475 = vmatpush.msk.msra.mxu0 %vm271_vm0, %v251_v6  ;;  %v307_v12 = vld [vmem:[%s652_s3 + $0x48] sm:$0xff]  ;;  %v306_v13 = vld [vmem:[%s652_s3 + $0x40] sm:$0xff]  ;;  %v304_v15 = vld [vmem:[%s652_s3 + $0x30] sm:$0xff] }
  0x10   : > { %338 = vmatpush.msra.mxu2 %v312_v3  ;;  %476 = vmatmul.msk.f32.vlgmr.msra.gmra.mxu0 %vm264_vm1, %v249_v4  ;;  %v303_v16 = vld [vmem:[%s652_s3 + $0x28] sm:$0xff]  ;;  %v302_v17 = vld [vmem:[%s652_s3 + $0x20] sm:$0xff]  ;;  %v301_v18 = vld [vmem:[%s652_s3 + $0x18] sm:$0xff] }
  0x11   : > { %485 = vmatpush.msra.mxu1 %v311_v5  ;;  %314 = vmatpush.msrb.mxu0 %v313_v2  ;;  %v300_v19 = vld [vmem:[%s652_s3 + $0x10] sm:$0xff]  ;;  %v299_v20 = vld [vmem:[%s652_s3 + $0x8] sm:$0xff]  ;;  %v298_v21 = vld [vmem:[%s652_s3] sm:$0xff] }
  0x12   : > { %339 = vmatpush.msra.mxu2 %v311_v5  ;;  %v366_v31 = vld [vmem:[%s654_s5] sm:$0xff]  ;;  %v367_v32 = vld [vmem:[%s654_s5 + $0x8] sm:$0xff] }
  0x13   : > { %486 = vmatpush.msra.mxu1 %v310_v8  ;;  %315 = vmatpush.msrb.mxu0 %v312_v3  ;;  %v364_v38 = vld [vmem:[%s653_s4] sm:$0xff]  ;;  %v365_v39 = vld [vmem:[%s653_s4 + $0x8] sm:$0xff] }
  0x14   : > { %340 = vmatpush.msra.mxu2 %v310_v8  ;;  %370 = vperm.xlu1 %509, %v366_v31  }
  0x15   : > { %261 = vperm.xlu0 %508, %v253_v7   ;;  %487 = vmatpush.msra.mxu1 %v309_v9 }
  0x16   : > { %341 = vmatpush.msra.mxu2 %v309_v9  ;;  %316 = vmatpush.msrb.mxu0 %v311_v5 }
  0x17   : > { %488 = vmatpush.msra.mxu1 %v308_v10 }
  0x18   : > { %342 = vmatpush.msra.mxu2 %v308_v10  ;;  %317 = vmatpush.msrb.mxu0 %v310_v8 }
  0x19   : > { %489 = vmatpush.msra.mxu1 %v307_v12  ;;  %477 = vmatmul.msk.f32.gmra.mxu0 %vm264_vm1, %v250_v11 }
  0x1a   : > { %343 = vmatpush.msra.mxu2 %v307_v12  ;;  %318 = vmatpush.msrb.mxu0 %v309_v9 }
  0x1b   : > { %490 = vmatpush.msra.mxu1 %v306_v13 }
  0x1c   : > { %344 = vmatpush.msra.mxu2 %v306_v13  ;;  %319 = vmatpush.msrb.mxu0 %v308_v10 }
  0x1d   : > { %491 = vmatpush.msra.mxu1 %v305_v14  ;;  %375 = vperm.xlu1 %509, %v367_v32  }
  0x1e   : > { %345 = vmatpush.msra.mxu2 %v305_v14  ;;  %320 = vmatpush.msrb.mxu0 %v307_v12 }
  0x1f   : > { %492 = vmatpush.msra.mxu1 %v304_v15 }
  0x20   : > { %346 = vmatpush.msra.mxu2 %v304_v15  ;;  %321 = vmatpush.msrb.mxu0 %v306_v13 }
  0x21   : > { %493 = vmatpush.msra.mxu1 %v303_v16 }
  0x22   : > { %322 = vmatpush.msrb.mxu0 %v305_v14  ;;  %347 = vmatpush.msra.mxu2 %v303_v16 }
  0x23   : > { %494 = vmatpush.msra.mxu1 %v302_v17 }
  0x24   : > { %323 = vmatpush.msrb.mxu0 %v304_v15  ;;  %348 = vmatpush.msra.mxu2 %v302_v17 }
  0x25   : > { %495 = vmatpush.msra.mxu1 %v301_v18 }
  0x26   : > { %324 = vmatpush.msrb.mxu0 %v303_v16  ;;  %349 = vmatpush.msra.mxu2 %v301_v18 }
  0x27   : > { %496 = vmatpush.msra.mxu1 %v300_v19 }
  0x28   : > { %325 = vmatpush.msrb.mxu0 %v302_v17  ;;  %350 = vmatpush.msra.mxu2 %v300_v19 }
  0x29   : > { %497 = vmatpush.msra.mxu1 %v299_v20 }
  0x2a   : > { %326 = vmatpush.msrb.mxu0 %v301_v18  ;;  %351 = vmatpush.msra.mxu2 %v299_v20 }
  0x2b   : > { %498 = vmatpush.msra.mxu1 %v298_v21 }
  0x2c   : > { %327 = vmatpush.msrb.mxu0 %v300_v19  ;;  %352 = vmatpush.msra.mxu2 %v298_v21 }
  0x2e   : > { %328 = vmatpush.msrb.mxu0 %v299_v20 }
  0x30   : > { %329 = vmatpush.msrb.mxu0 %v298_v21 }
  0x7f   : > { %v257_v22 = vpop.permute.xlu0 %256 }
  0x86   : > { %v371_v40 = vpop.permute.xlu1 %370 }
  0x87   : > { %v262_v25 = vpop.permute.xlu0 %261 }
  0x8d   : > { %v292_v23 = vpop.f32.mrf.mxu0 }
  0x8e   : > { %v293_v24 = vadd.f32 %v292_v23, %v257_v22 }
  0x8f   : > { %v376_v44 = vpop.permute.xlu1 %375 }
  0x90   : > { %330 = vmatmul.f32.vlgmr.msrb.gmra.mxu0 %v293_v24 }
  0x96   : > { %v295_v26 = vpop.f32.mrf.mxu0 }
  0x97   : > { %v296_v27 = vadd.f32 %v295_v26, %v262_v25 }
  0x99   : > { %333 = vmatmul.f32.vlgmr.msra.gmra.mxu1 %v296_v27 }
 0x10d   : > { %v331_v28 = vpop.f32.mrf.mxu0 }
 0x10e   : > { %353 = vmatmul.f32.vlgmr.msra.gmra.mxu2 %v331_v28 }
 0x116   : > { %v334_v29 = vpop.f32.mrf.mxu1 }
 0x117   : > { %356 = vmatmul.f32.gmra.mxu2 %v334_v29 }
 0x191   : > { %v354_v30 = vpop.f32.mrf.mxu2 }
 0x192   : > { %v360_v34 = vmul.f32 2.0, %v354_v30 }
 0x194   : > { %v362_v37 = vsub.f32 %v360_v34, %v293_v24 }
 0x19a   : > { %v357_v33 = vpop.f32.mrf.mxu2 }
 0x19b   : > { %v361_v35 = vmul.f32 2.0, %v357_v33 }
 0x19d   : > { %v363_v36 = vsub.f32 %v361_v35, %v296_v27 }
 0x19f   : > { %395 = vmatpush.msra.mxu3 %v363_v36 }
 0x1a1   : > { %396 = vmatpush.msra.mxu3 %v362_v37 }
 0x1a3   : > { %397 = vmatpush.msra.mxu3 %v334_v29 }
 0x1a5   : > { %398 = vmatpush.msra.mxu3 %v331_v28 }
 0x1a7   : > { %399 = vmatpush.msra.mxu3 %v296_v27 }
 0x1a9   : > { %400 = vmatpush.msra.mxu3 %v293_v24 }
 0x1aa   : > { %478 = vmatmul.msk.f32.vlgmr.msra.gmra.mxu3 %vm378_vm2, %v364_v38 }
 0x1b2   : > { %479 = vmatmul.msk.f32.gmra.mxu3 %vm378_vm2, %v365_v39 }
 0x22d   : > { %v402_v41 = vpop.f32.mrf.mxu3 }
 0x22e   : > { %v403_v42 = vadd.f32 %v402_v41, %v371_v40 }
 0x230   : > { %v408_v43 = vadd.f32 %v403_v42, %v293_v24 }
 0x232   : > { %410 = vst [vmem:[%s248_s10] sm:$0xff] %v408_v43 }
 0x235   : > { %v405_v45 = vpop.f32.mrf.mxu3 }
 0x236   : > { %v406_v46 = vadd.f32 %v405_v45, %v376_v44 }
 0x238   : > { %v409_v47 = vadd.f32 %v406_v46, %v296_v27 }
 0x23a   : > { %411 = vst [vmem:[%s248_s10 + $0x8] sm:$0xff] %v409_v47 }
 0x23b PF: > { %s16_s21 = sadd.s32 1, %s516_s21  }
 0x23c   : > { %p13_p4 = scmp.ge.s32.totalorder %s16_s21, 4  }
 0x23e   :  { %15 = sbr.rel (!%p13_p4) target bundleno = 1 (0x1), region = 74 }

</bundles_post_ra>
